<compile_context>
chip_gen: v6e
topology: v6e:2x2x1
jax: 0.10.0
libtpu: 0.0.40
codegen_flags: <defaults>
</compile_context>

<pallas_src>
import jax
import jax.numpy as jnp
from jax.experimental import pallas as pl
from jax.experimental.pallas import tpu as pltpu


# ----------------------------------------------------------------------------
# Branch-free float32 arctan (Cephes atanf), valid for x >= 0 (vectorized).
# Max error ~a few f32 ulps — well inside the tolerance of the loss.
# ----------------------------------------------------------------------------
def _atan_pos(x):
    tan3pi8 = 2.414213562373095    # tan(3*pi/8)
    tanpi8 = 0.4142135623730950    # tan(pi/8)

    big = x > tan3pi8
    mid = jnp.logical_and(x > tanpi8, jnp.logical_not(big))

    y0 = jnp.where(big, jnp.pi / 2.0, jnp.where(mid, jnp.pi / 4.0, 0.0))

    x_big = -1.0 / x               # only selected where x > 2.414 (x > 0 always)
    x_mid = (x - 1.0) / (x + 1.0)  # denominator > 1 for x >= 0
    xr = jnp.where(big, x_big, jnp.where(mid, x_mid, x))

    z = xr * xr
    p = ((((8.05374449538e-2 * z - 1.38776856032e-1) * z
           + 1.99777106478e-1) * z - 3.33329491539e-1) * z) * xr + xr
    return y0 + p


# ----------------------------------------------------------------------------
# Pallas kernel: whole QALLoss in one invocation.
# ----------------------------------------------------------------------------
def _qal_loss_kernel(q_out_ref, q_exp_ref, loss_ref):
    q_out = q_out_ref[...]                                   # (N, 4) f32
    q_exp = q_exp_ref[...]                                   # (N, 4) f32
    n = q_out.shape[0]

    # w-component of conj(output) ⊗ expected  ==  <output, expected>.
    # (The vector part of the quaternion product is unused by the loss.)
    w = jnp.sum(q_out * q_exp, axis=1, keepdims=True)        # (N, 1)

    eps = 0.0001
    w = jnp.clip(w, -1.0 + eps, 1.0 - eps)

    # acos(w) = 2 * atan( sqrt((1 - w) / (1 + w)) ),   |w| <= 1 - eps
    half_angle = _atan_pos(jnp.sqrt((1.0 - w) / (1.0 + w)))  # = acos(w) / 2
    angles_rad = 4.0 * half_angle                            # 2 * acos(w)
    sq = angles_rad * angles_rad                             # (N, 1)

    # mean over the batch -> (1, 1) scalar output
    loss_ref[...] = jnp.sum(sq, axis=0, keepdims=True) * (1.0 / float(n))


@jax.jit
def qal_loss(output, expected):
    """Pallas QALLoss forward. output/expected: (N, 4) quaternions -> scalar."""
    output = output.astype(jnp.float32)
    expected = expected.astype(jnp.float32)
    loss = pl.pallas_call(
        _qal_loss_kernel,
        out_shape=jax.ShapeDtypeStruct((1, 1), jnp.float32),
        in_specs=[
            pl.BlockSpec(memory_space=pltpu.MemorySpace.VMEM),  # output, resident
            pl.BlockSpec(memory_space=pltpu.MemorySpace.VMEM),  # expected, resident
        ],
        out_specs=pl.BlockSpec(memory_space=pltpu.MemorySpace.VMEM),
    )(output, expected)
    return loss[0, 0]


# ----------------------------------------------------------------------------
# Pure-JAX reference (literal transcription of the PyTorch forward).
# ----------------------------------------------------------------------------
def _reference_qal_loss(q_out, q_exp):
    w1, v1 = q_out[:, 0], q_out[:, 1:]
    conj = jnp.concatenate([w1[:, None], -v1], axis=1)
    w1c, v1c = conj[:, 0], conj[:, 1:]
    w2, v2 = q_exp[:, 0], q_exp[:, 1:]
    w = w1c * w2 - jnp.sum(v1c * v2, axis=1)
    v = (w1c[:, None] * v2 + w2[:, None] * v1c + jnp.cross(v1c, v2))
    dist = jnp.concatenate([w[:, None], v], axis=1)
    wd = dist[:, 0]
    eps = 0.0001
    ang = 2.0 * jnp.arccos(jnp.clip(wd, -1.0 + eps, 1.0 - eps))
    return jnp.mean(ang ** 2)


if __name__ == "__main__":
    BATCH = 8   # number of quaternions

    key = jax.random.PRNGKey(0)
    k1, k2 = jax.random.split(key)
    q_out = jax.random.normal(k1, (BATCH, 4), jnp.float32)
    q_exp = jax.random.normal(k2, (BATCH, 4), jnp.float32)
    # Typical usage: unit quaternions.
    q_out = q_out / jnp.linalg.norm(q_out, axis=1, keepdims=True)
    q_exp = q_exp / jnp.linalg.norm(q_exp, axis=1, keepdims=True)

    loss = jax.block_until_ready(qal_loss(q_out, q_exp))
    ref = _reference_qal_loss(q_out, q_exp)

    assert loss.shape == (), loss.shape
    assert bool(jnp.isfinite(loss))
    assert bool(jnp.allclose(loss, ref, rtol=1e-4, atol=1e-4)), (loss, ref)
    print("KERNEL_OK")
</pallas_src>

<mosaic_0001>
module attributes {stable_mosaic.version = 11 : i64} {
  func.func @_qal_loss_kernel(%arg0: memref<8x4xf32, #tpu.memory_space<vmem>>, %arg1: memref<8x4xf32, #tpu.memory_space<vmem>>, %arg2: memref<1x1xf32, #tpu.memory_space<vmem>>) attributes {dimension_semantics = [], scalar_prefetch = 0 : i64, scratch_operands = 0 : i64, tpu.core_type = #tpu.core_type<tc>} {
    %c0 = arith.constant 0 : index
    %c0_0 = arith.constant 0 : index
    %0 = vector.load %arg0[%c0, %c0_0] : memref<8x4xf32, #tpu.memory_space<vmem>>, vector<8x4xf32>
    %c0_1 = arith.constant 0 : index
    %c0_2 = arith.constant 0 : index
    %1 = vector.load %arg1[%c0_1, %c0_2] : memref<8x4xf32, #tpu.memory_space<vmem>>, vector<8x4xf32>
    %2 = arith.mulf %0, %1 : vector<8x4xf32>
    %cst = arith.constant dense<0.000000e+00> : vector<8xf32>
    %3 = vector.multi_reduction <add>, %2, %cst [1] : vector<8x4xf32> to vector<8xf32>
    %4 = vector.shape_cast %3 : vector<8xf32> to vector<8x1xf32>
    %cst_3 = arith.constant -0.999899983 : f32
    %cst_4 = arith.constant 0.999899983 : f32
    %5 = vector.broadcast %cst_3 : f32 to vector<8x1xf32>
    %6 = arith.maximumf %5, %4 : vector<8x1xf32>
    %7 = vector.broadcast %cst_4 : f32 to vector<8x1xf32>
    %8 = arith.minimumf %7, %6 : vector<8x1xf32>
    %cst_5 = arith.constant 1.000000e+00 : f32
    %9 = vector.broadcast %cst_5 : f32 to vector<8x1xf32>
    %10 = arith.subf %9, %8 : vector<8x1xf32>
    %cst_6 = arith.constant 1.000000e+00 : f32
    %11 = vector.broadcast %cst_6 : f32 to vector<8x1xf32>
    %12 = arith.addf %11, %8 : vector<8x1xf32>
    %13 = arith.divf %10, %12 : vector<8x1xf32>
    %14 = math.sqrt %13 : vector<8x1xf32>
    %cst_7 = arith.constant 2.41421366 : f32
    %15 = vector.broadcast %cst_7 : f32 to vector<8x1xf32>
    %16 = arith.cmpf ogt, %14, %15 : vector<8x1xf32>
    %cst_8 = arith.constant 0.414213568 : f32
    %17 = vector.broadcast %cst_8 : f32 to vector<8x1xf32>
    %18 = arith.cmpf ogt, %14, %17 : vector<8x1xf32>
    %cst_9 = arith.constant dense<true> : vector<8x1xi1>
    %19 = arith.xori %16, %cst_9 : vector<8x1xi1>
    %20 = arith.andi %18, %19 : vector<8x1xi1>
    %cst_10 = arith.constant 0.785398185 : f32
    %cst_11 = arith.constant 0.000000e+00 : f32
    %21 = vector.broadcast %cst_10 : f32 to vector<8x1xf32>
    %22 = vector.broadcast %cst_11 : f32 to vector<8x1xf32>
    %23 = arith.select %20, %21, %22 : vector<8x1xi1>, vector<8x1xf32>
    %cst_12 = arith.constant 1.57079637 : f32
    %24 = vector.broadcast %cst_12 : f32 to vector<8x1xf32>
    %25 = arith.select %16, %24, %23 : vector<8x1xi1>, vector<8x1xf32>
    %cst_13 = arith.constant -1.000000e+00 : f32
    %26 = vector.broadcast %cst_13 : f32 to vector<8x1xf32>
    %27 = arith.divf %26, %14 : vector<8x1xf32>
    %cst_14 = arith.constant 1.000000e+00 : f32
    %28 = vector.broadcast %cst_14 : f32 to vector<8x1xf32>
    %29 = arith.subf %14, %28 : vector<8x1xf32>
    %cst_15 = arith.constant 1.000000e+00 : f32
    %30 = vector.broadcast %cst_15 : f32 to vector<8x1xf32>
    %31 = arith.addf %14, %30 : vector<8x1xf32>
    %32 = arith.divf %29, %31 : vector<8x1xf32>
    %33 = arith.select %20, %32, %14 : vector<8x1xi1>, vector<8x1xf32>
    %34 = arith.select %16, %27, %33 : vector<8x1xi1>, vector<8x1xf32>
    %35 = arith.mulf %34, %34 : vector<8x1xf32>
    %cst_16 = arith.constant 0.0805374458 : f32
    %36 = vector.broadcast %cst_16 : f32 to vector<8x1xf32>
    %37 = arith.mulf %36, %35 : vector<8x1xf32>
    %cst_17 = arith.constant 0.138776854 : f32
    %38 = vector.broadcast %cst_17 : f32 to vector<8x1xf32>
    %39 = arith.subf %37, %38 : vector<8x1xf32>
    %40 = arith.mulf %39, %35 : vector<8x1xf32>
    %cst_18 = arith.constant 0.199777111 : f32
    %41 = vector.broadcast %cst_18 : f32 to vector<8x1xf32>
    %42 = arith.addf %40, %41 : vector<8x1xf32>
    %43 = arith.mulf %42, %35 : vector<8x1xf32>
    %cst_19 = arith.constant 0.333329499 : f32
    %44 = vector.broadcast %cst_19 : f32 to vector<8x1xf32>
    %45 = arith.subf %43, %44 : vector<8x1xf32>
    %46 = arith.mulf %45, %35 : vector<8x1xf32>
    %47 = arith.mulf %46, %34 : vector<8x1xf32>
    %48 = arith.addf %47, %34 : vector<8x1xf32>
    %49 = arith.addf %25, %48 : vector<8x1xf32>
    %cst_20 = arith.constant 4.000000e+00 : f32
    %50 = vector.broadcast %cst_20 : f32 to vector<8x1xf32>
    %51 = arith.mulf %50, %49 : vector<8x1xf32>
    %52 = arith.mulf %51, %51 : vector<8x1xf32>
    %cst_21 = arith.constant dense<0.000000e+00> : vector<1xf32>
    %53 = vector.multi_reduction <add>, %52, %cst_21 [0] : vector<8x1xf32> to vector<1xf32>
    %54 = vector.shape_cast %53 : vector<1xf32> to vector<1x1xf32>
    %cst_22 = arith.constant 1.250000e-01 : f32
    %55 = vector.broadcast %cst_22 : f32 to vector<1x1xf32>
    %56 = arith.mulf %54, %55 : vector<1x1xf32>
    %c0_23 = arith.constant 0 : index
    %c0_24 = arith.constant 0 : index
    %57 = vector.load %arg2[%c0_23, %c0_24] : memref<1x1xf32, #tpu.memory_space<vmem>>, vector<1x1xf32>
    tpu.vector_store %arg2[%c0_23, %c0_24], %56 {strides = array<i32>} : memref<1x1xf32, #tpu.memory_space<vmem>>, vector<1x1xf32>,
    return
  }
}

</mosaic_0001>

<bundles_post_ra>
// kernel: qal_loss.1
= control target key start
LH: loop header
LB: loop body
LE: loop exit
PB: predicated region body
PF: predicated region fallthrough
CT: control target
= control target key end

     0   :  { %vm15_vm0 = vcmask 31744   ;;  %s149_s0 = inlined_call_operand.vmem [shape: f32[8,4], index: 0, kind: input, shape index: {}]   ;;  %s150_s1 = inlined_call_operand.vmem [shape: f32[8,4], index: 1, kind: input, shape index: {}]   ;;  %s151_s2 = inlined_call_operand.hbm [shape: f32[1,1], index: 2, kind: output, shape index: {}]  }
   0x1   :  { %v12_v0 = vld [vmem:[%s149_s0] sm:$0xff] }
   0x2   :  { %v13_v1 = vld [vmem:[%s150_s1] sm:$0xff] }
   0x3   :  { %7 = vsyncpa [#allocation3], 0  ;;  %v14_v2 = vmul.f32 %v13_v1, %v12_v0  ;;  %vm119_vm5 = vmmov 1   ;;  %v120_v31 = vmov 0.0   ;;  %s121_s0 = smov [#allocation2]   ;;  %vm66_vm8 = vcmask 0  }
   0x4   :  { %s74_s1 = sshll.u32 %s121_s0, 4  ;;  %s75_s1 = int_to_ptr.vmem [resolvable:$true] %s74_s1 }
   0x5   :  { %v16_v3 = vsel %vm15_vm0, %v14_v2, 0.0  ;;  %s97_s13 = scalar_lea.vmem %s75_s1, 16  ;;  %s101_s14 = scalar_lea.vmem %s75_s1, 32 }
   0x6   :  { %17 = vadd.xlane.f32.xlu0 %v16_v3  ;;  %p98_p0 = scmp.ne.s32.totalorder %s75_s1, %s97_s13  ;;  %p102_p1 = scmp.lt.s32.totalorder %s75_s1, %s75_s1 }
   0x7   :  { %p103_p2 = scmp.lt.s32.totalorder %s101_s14, %s97_s13 }
   0x9   :  { %p104_p3 = por %p103_p2, %p102_p1 }
   0xb   :  { %p105_p4 = pnand %p104_p3, %p98_p0 }
  0x8f   :  { %v18_v4 = vpop.xlane.xlu0 %17 }
  0x90   :  { %v82_v5 = vclamps-f32 %v18_v4, 0.9999 }
  0x92   :  { %v22_v6 = vadd.f32 1.0, %v82_v5  ;;  %v21_v7 = vsub.f32 1.0, %v82_v5 }
  0x94   :  { %89 = vrcp.f32 %v22_v6 }
  0xa1   :  { %v90_v8 = vpop.eup %89 }
  0xa2   :  { %v24_v9 = vmul.f32 %v90_v8, %v21_v7 }
  0xa4   :  { %91 = vrsqrt.f32 %v24_v9  ;;  %vm27_vm1 = vcmp.eq.f32.partialorder %v24_v9, inf  ;;  %v30_v12 = vand.u32 2147483648, %v24_v9  ;;  %vm29_vm2 = vcmp.eq.f32.partialorder %v24_v9, 0.0 }
  0xb1   :  { %v92_v10 = vpop.eup %91 }
  0xb2   :  { %v26_v11 = vmul.f32 %v92_v10, %v24_v9 }
  0xb4   :  { %v28_v13 = vsel %vm27_vm1, %v24_v9, %v26_v11 }
  0xb5   :  { %v31_v14 = vsel %vm29_vm2, %v30_v12, %v28_v13 }
  0xb6   :  { %v41_v15 = vadd.f32 1.0, %v31_v14  ;;  %93 = vrcp.f32 %v31_v14  ;;  %vm32_vm3 = vcmp.gt.f32.partialorder %v31_v14, 2.4142137  ;;  %vm33_vm4 = vcmp.gt.f32.partialorder %v31_v14, 0.41421357 }
  0xb7   :  { %vm34_vm6 = vmxor %vm32_vm3, %vm119_vm5  ;;  %v83_v17 = vadd.f32 -1.0, %v31_v14 }
  0xb8   :  { %95 = vrcp.f32 %v41_v15  ;;  %vm35_vm7 = vmand %vm33_vm4, %vm34_vm6 }
  0xb9   :  { %v36_v32 = vsel %vm35_vm7, 0.7853982, %v120_v31 }
  0xba   :  { %v37_v35 = vsel %vm32_vm3, 1.5707964, %v36_v32 }
  0xc3   :  { %v94_v16 = vpop.eup %93 }
  0xc4   :  { %v39_v20 = vmul.f32 -1.0, %v94_v16 }
  0xc5   :  { %v96_v18 = vpop.eup %95 }
  0xc6   :  { %v43_v19 = vmul.f32 %v96_v18, %v83_v17 }
  0xc8   :  { %v44_v21 = vsel %vm35_vm7, %v43_v19, %v31_v14 }
  0xc9   :  { %v45_v22 = vsel %vm32_vm3, %v39_v20, %v44_v21 }
  0xca   :  { %v46_v23 = vmul.f32 %v45_v22, %v45_v22 }
  0xcc   :  { %v47_v24 = vmul.f32 0.080537446, %v46_v23 }
  0xce   :  { %v84_v25 = vadd.f32 -0.13877685, %v47_v24 }
  0xd0   :  { %v49_v26 = vmul.f32 %v84_v25, %v46_v23 }
  0xd2   :  { %v50_v27 = vadd.f32 0.19977711, %v49_v26 }
  0xd4   :  { %v51_v28 = vmul.f32 %v50_v27, %v46_v23 }
  0xd6   :  { %v85_v29 = vadd.f32 -0.3333295, %v51_v28 }
  0xd8   :  { %v53_v30 = vmul.f32 %v85_v29, %v46_v23 }
  0xda   :  { %v54_v33 = vmul.f32 %v53_v30, %v45_v22 }
  0xdc   :  { %v55_v34 = vadd.f32 %v54_v33, %v45_v22 }
  0xde   :  { %v56_v36 = vadd.f32 %v55_v34, %v37_v35 }
  0xe0   :  { %v57_v37 = vmul.f32 4.0, %v56_v36 }
  0xe2   :  { %v58_v38 = vmul.f32 %v57_v37, %v57_v37 }
  0xe4   :  { %v59_v39 = vrot.slane %v58_v38, 4 }
  0xe6   :  { %v60_v40 = vadd.f32 %v59_v39, %v58_v38 }
  0xe8   :  { %v61_v41 = vrot.slane %v60_v40, 2 }
  0xea   :  { %v62_v42 = vadd.f32 %v61_v41, %v60_v40 }
  0xec   :  { %v63_v43 = vrot.slane %v62_v42, 1 }
  0xee   :  { %v64_v44 = vadd.f32 %v63_v43, %v62_v42 }
  0xf0   :  { %v65_v45 = vmul.f32 0.125, %v64_v44 }
  0xf2   :  { %67 = vst.msk [vmem:[#allocation2] sm:$0x1] %vm66_vm8, %v65_v45 }
  0xf3   :  { %108 = shalt.err (!%p105_p4)
}
  0xf4   :  { %77 = dma.vmem_to_hbm [thread:$0]  %s75_s1, 16, %s151_s2, [#allocation3]  }
  0xf5   :  { %117 = dma.done.wait [#allocation3], 16  }
  0xf6   :  { %118 = vsyncadd [#allocation3], 4294967280 }
  0xf7   :  { %81 = vsyncpa [#allocation3], 1 }

</bundles_post_ra>
